<compile_context>
chip_gen: v7x
topology: tpu7x:2x2x1
jax: 0.10.0
libtpu: 0.0.40
codegen_flags: <defaults>
</compile_context>

<pallas_src>
from functools import partial

import jax
import jax.numpy as jnp
from jax.experimental import pallas as pl
from jax.experimental.pallas import tpu as pltpu


def _layernorm_kernel(x_ref, gamma_ref, beta_ref, o_ref, *, eps, n_elem):
    # x_ref: (TB, CHW); gamma_ref / beta_ref: (1, CHW) pre-expanded per element.
    x = x_ref[...].astype(jnp.float32)

    # Per-sample (per-row) statistics; row reductions run on the XLU.
    mean = jnp.sum(x, axis=-1, keepdims=True) * (1.0 / n_elem)              # (TB, 1)
    d = x - mean
    denom = max(n_elem - 1, 1)                                              # unbiased; guard CHW==1
    var = jnp.sum(d * d, axis=-1, keepdims=True) * (1.0 / denom)
    inv = 1.0 / (jnp.sqrt(var) + eps)                                       # per-row only (TB values)

    # y = (x - mean) * (gamma / (std + eps)) + beta -> one mul + one FMA per element.
    o_ref[...] = (d * (gamma_ref[...] * inv) + beta_ref[...]).astype(o_ref.dtype)


def _choose_block_rows(n, chw, itemsize,
                       target_bytes=6 << 20, vmem_budget_bytes=40 << 20):
    """Pick rows-per-block (TB) and report the per-step VMEM footprint.

    - Sublane-full: TB is a multiple of 8 (32-bit), 16 (16-bit), 32 (8-bit).
    - Targets ~6 MiB input tiles (amortizes the ~0.35 us/step overhead to
      <10% even at v7x's ~3.2 TB/s) but shrinks until 2x double-buffered
      input + output tiles plus ~3 live (TB, CHW) f32 intermediates fit in
      ~40 MiB.
    - Caps TB to round_up(ceil(N/2), sublane) so the parallel grid axis has
      at least 2 steps (both v7x TensorCores get work) when N is big enough.
    """
    sublane = 8 * max(1, 4 // max(1, itemsize))
    row_bytes = chw * itemsize

    def footprint(rows):
        # 2x double-buffered input + 2x output tiles, plus ~3 live f32
        # intermediates inside the kernel (upcast x, d, output expression).
        return 4 * rows * row_bytes + 3 * rows * chw * 4

    tb = max(sublane, (target_bytes // max(1, row_bytes)) // sublane * sublane)
    while tb > sublane and footprint(tb) > vmem_budget_bytes:
        tb -= sublane

    if n >= 2 * sublane:
        # Ensure >= 2 grid steps: cap at ceil(N/2) rounded up to a sublane multiple.
        half = -(-n // 2)
        half = -(-half // sublane) * sublane
        tb = min(tb, half)

    if n <= tb:
        tb = n
    return tb, footprint(tb)


def layer_norm(x, gamma, beta, eps=1e-5):
    """LayerNorm matching the PyTorch module. x: (N, C, H, W); gamma/beta: (C,)."""
    N, C, H, W = x.shape
    CHW = C * H * W
    x2 = x.reshape(N, CHW)

    # Pre-expand affine params to per-element (1, CHW) vectors so the kernel
    # stays flat / lane-dense with no in-kernel channel broadcast.  Under jit
    # with weight inputs this constant-folds; callers may also hoist it.
    g2 = jnp.repeat(gamma.astype(jnp.float32), H * W).reshape(1, CHW)
    b2 = jnp.repeat(beta.astype(jnp.float32), H * W).reshape(1, CHW)

    TB, vmem_footprint = _choose_block_rows(N, CHW, x.dtype.itemsize)
    grid = (pl.cdiv(N, TB),)

    # Only raise the scoped-VMEM limit when the footprint actually needs it
    # (48 MiB is safe on v5e/v6e (128 MiB physical) and v7x (64 MiB physical)).
    vmem_limit = (48 << 20) if vmem_footprint > (16 << 20) else None

    out = pl.pallas_call(
        partial(_layernorm_kernel, eps=eps, n_elem=CHW),
        out_shape=jax.ShapeDtypeStruct((N, CHW), x.dtype),
        grid=grid,
        in_specs=[
            pl.BlockSpec((TB, CHW), lambda i: (i, 0)),
            pl.BlockSpec((1, CHW), lambda i: (0, 0)),
            pl.BlockSpec((1, CHW), lambda i: (0, 0)),
        ],
        out_specs=pl.BlockSpec((TB, CHW), lambda i: (i, 0)),
        compiler_params=pltpu.CompilerParams(
            dimension_semantics=("parallel",),
            vmem_limit_bytes=vmem_limit),
    )(x2, g2, b2)
    return out.reshape(N, C, H, W)


def layer_norm_ref(x, gamma, beta, eps=1e-5):
    # Pure-JAX reference matching the PyTorch forward exactly.
    N = x.shape[0]
    flat = x.reshape(N, -1).astype(jnp.float32)
    mean = flat.mean(axis=1).reshape(N, 1, 1, 1)
    std = flat.std(axis=1, ddof=1).reshape(N, 1, 1, 1)
    y = (x.astype(jnp.float32) - mean) / (std + eps)
    C = gamma.shape[0]
    return y * gamma.reshape(1, C, 1, 1) + beta.reshape(1, C, 1, 1)


if __name__ == "__main__":
    key = jax.random.PRNGKey(0)
    kx, kg, kx2 = jax.random.split(key, 3)

    # Primary case: shape implied by the module (batch=2, channels=4, 16x16).
    N, C, H, W = 2, 4, 16, 16
    x = jax.random.normal(kx, (N, C, H, W), dtype=jnp.float32)
    # nn.Parameter(torch.Tensor(num_features).uniform_()) -> U[0, 1)
    gamma = jax.random.uniform(kg, (C,), dtype=jnp.float32)
    beta = jnp.zeros((C,), dtype=jnp.float32)

    out = layer_norm(x, gamma, beta)
    out = jax.block_until_ready(out)
    ref = layer_norm_ref(x, gamma, beta)
    assert out.shape == (N, C, H, W)
    assert jnp.allclose(out, ref, atol=1e-5, rtol=1e-5)

    # Second small case exercising a multi-step grid and a ragged last block
    # (N % TB != 0): validates that masked writes keep padded rows harmless.
    N2, C2, H2, W2 = 17, 4, 8, 8
    x_b = jax.random.normal(kx2, (N2, C2, H2, W2), dtype=jnp.float32)
    out_b = jax.block_until_ready(layer_norm(x_b, gamma, beta))
    ref_b = layer_norm_ref(x_b, gamma, beta)
    assert out_b.shape == (N2, C2, H2, W2)
    assert jnp.allclose(out_b, ref_b, atol=1e-5, rtol=1e-5)

    print("KERNEL_OK")
</pallas_src>

<mosaic_0001>
module attributes {stable_mosaic.version = 11 : i64} {
  func.func @_layernorm_kernel(%arg0: i32, %arg1: memref<2x1024xf32, #tpu.memory_space<vmem>>, %arg2: memref<1x1024xf32, #tpu.memory_space<vmem>>, %arg3: memref<1x1024xf32, #tpu.memory_space<vmem>>, %arg4: memref<2x1024xf32, #tpu.memory_space<vmem>>) attributes {dimension_semantics = [#tpu.dimension_semantics<parallel>], iteration_bounds = array<i64: 1>, scalar_prefetch = 0 : i64, scratch_operands = 0 : i64, tpu.core_type = #tpu.core_type<tc>, window_params = [{transform_indices = @transform_0, window_bounds = array<i64: 2, 1024>}, {pipeline_mode = #tpu.pipeline_mode<synchronous>, transform_indices = @transform_1, window_bounds = array<i64: 1, 1024>}, {pipeline_mode = #tpu.pipeline_mode<synchronous>, transform_indices = @transform_2, window_bounds = array<i64: 1, 1024>}, {transform_indices = @transform_3, window_bounds = array<i64: 2, 1024>}]} {
    %c0 = arith.constant 0 : index
    %c0_0 = arith.constant 0 : index
    %0 = vector.load %arg1[%c0, %c0_0] : memref<2x1024xf32, #tpu.memory_space<vmem>>, vector<2x1024xf32>
    %cst = arith.constant dense<0.000000e+00> : vector<2xf32>
    %1 = vector.multi_reduction <add>, %0, %cst [1] : vector<2x1024xf32> to vector<2xf32>
    %2 = vector.shape_cast %1 : vector<2xf32> to vector<2x1xf32>
    %cst_1 = arith.constant 9.765625E-4 : f32
    %3 = vector.broadcast %cst_1 : f32 to vector<2x1xf32>
    %4 = arith.mulf %2, %3 : vector<2x1xf32>
    %5 = vector.broadcast %4 : vector<2x1xf32> to vector<2x1024xf32>
    %6 = arith.subf %0, %5 : vector<2x1024xf32>
    %7 = arith.mulf %6, %6 : vector<2x1024xf32>
    %cst_2 = arith.constant dense<0.000000e+00> : vector<2xf32>
    %8 = vector.multi_reduction <add>, %7, %cst_2 [1] : vector<2x1024xf32> to vector<2xf32>
    %9 = vector.shape_cast %8 : vector<2xf32> to vector<2x1xf32>
    %cst_3 = arith.constant 9.77517105E-4 : f32
    %10 = vector.broadcast %cst_3 : f32 to vector<2x1xf32>
    %11 = arith.mulf %9, %10 : vector<2x1xf32>
    %12 = math.sqrt %11 : vector<2x1xf32>
    %cst_4 = arith.constant 9.99999974E-6 : f32
    %13 = vector.broadcast %cst_4 : f32 to vector<2x1xf32>
    %14 = arith.addf %12, %13 : vector<2x1xf32>
    %cst_5 = arith.constant 1.000000e+00 : f32
    %15 = vector.broadcast %cst_5 : f32 to vector<2x1xf32>
    %16 = arith.divf %15, %14 : vector<2x1xf32>
    %c0_6 = arith.constant 0 : index
    %c0_7 = arith.constant 0 : index
    %17 = vector.load %arg2[%c0_6, %c0_7] : memref<1x1024xf32, #tpu.memory_space<vmem>>, vector<1x1024xf32>
    %18 = vector.broadcast %17 : vector<1x1024xf32> to vector<2x1024xf32>
    %19 = vector.broadcast %16 : vector<2x1xf32> to vector<2x1024xf32>
    %20 = arith.mulf %18, %19 : vector<2x1024xf32>
    %21 = arith.mulf %6, %20 : vector<2x1024xf32>
    %c0_8 = arith.constant 0 : index
    %c0_9 = arith.constant 0 : index
    %22 = vector.load %arg3[%c0_8, %c0_9] : memref<1x1024xf32, #tpu.memory_space<vmem>>, vector<1x1024xf32>
    %23 = vector.broadcast %22 : vector<1x1024xf32> to vector<2x1024xf32>
    %24 = arith.addf %21, %23 : vector<2x1024xf32>
    %c0_10 = arith.constant 0 : index
    %c0_11 = arith.constant 0 : index
    %25 = vector.load %arg4[%c0_10, %c0_11] : memref<2x1024xf32, #tpu.memory_space<vmem>>, vector<2x1024xf32>
    tpu.vector_store %arg4[%c0_10, %c0_11], %24 {strides = array<i32>} : memref<2x1024xf32, #tpu.memory_space<vmem>>, vector<2x1024xf32>,
    return
  }
  func.func @transform_0(%arg0: i32) -> (i32, i32) {
    %c0_i32 = arith.constant 0 : i32
    %c0_i32_0 = arith.constant 0 : i32
    return %arg0, %c0_i32 : i32, i32
  }
  func.func @transform_1(%arg0: i32) -> (i32, i32) {
    %c0_i32 = arith.constant 0 : i32
    %c0_i32_0 = arith.constant 0 : i32
    %c0_i32_1 = arith.constant 0 : i32
    return %c0_i32, %c0_i32_0 : i32, i32
  }
  func.func @transform_2(%arg0: i32) -> (i32, i32) {
    %c0_i32 = arith.constant 0 : i32
    %c0_i32_0 = arith.constant 0 : i32
    %c0_i32_1 = arith.constant 0 : i32
    return %c0_i32, %c0_i32_0 : i32, i32
  }
  func.func @transform_3(%arg0: i32) -> (i32, i32) {
    %c0_i32 = arith.constant 0 : i32
    %c0_i32_0 = arith.constant 0 : i32
    return %arg0, %c0_i32 : i32, i32
  }
}

</mosaic_0001>

<bundles_post_ra>
// kernel: tpu_custom_call.1
= control target key start
LH: loop header
LB: loop body
LE: loop exit
PB: predicated region body
PF: predicated region fallthrough
CT: control target
= control target key end

     0   :  { %8 = vsyncpa [#allocation3], 0  ;;  %s622_s0 = inlined_call_operand.hbm [shape: f32[2,1024], index: 0, kind: input, shape index: {}]   ;;  %s623_s1 = inlined_call_operand.hbm [shape: f32[1,1024], index: 1, kind: input, shape index: {}]   ;;  %s624_s2 = inlined_call_operand.hbm [shape: f32[1,1024], index: 2, kind: input, shape index: {}]   ;;  %s625_s3 = inlined_call_operand.hbm [shape: f32[2,1024], index: 3, kind: output, shape index: {}]  }
   0x1   :  { %9 = vsyncpa [#allocation6], 0 }
   0x2   :  { %10 = vsyncpa [#allocation4], 0  ;;  %s492_s12 = smov [#allocation5]   ;;  %s493_s14 = smov [#allocation2]  }
   0x3   :  { %s27_s13 = sshll.u32 %s492_s12, 4  ;;  %s17_s15 = sshll.u32 %s493_s14, 4  ;;  %s28_s13 = int_to_ptr.vmem [resolvable:$true] %s27_s13  ;;  %s18_s15 = int_to_ptr.vmem [resolvable:$true] %s17_s15 }
   0x4   :  { %s398_s18 = scalar_lea.hbm %s623_s1, 128 }
   0x5   :  { %p399_p0 = scmp.ne.s32.totalorder %s623_s1, %s398_s18  ;;  %p402_p1 = scmp.lt.u32.totalorder %s398_s18, %s623_s1 }
   0x7   :  { %p404_p2 = pnand %p402_p1, %p399_p0 }
   0x9   :  { %407 = shalt.err (!%p404_p2)
}
   0xa   :  { %s408_s23 = scalar_lea.vmem %s28_s13, 128  ;;  %p413_p4 = scmp.lt.s32.totalorder %s28_s13, %s28_s13 }
   0xb   :  { %p409_p3 = scmp.ne.s32.totalorder %s28_s13, %s408_s23  ;;  %p414_p5 = scmp.lt.s32.totalorder %s408_s23, %s408_s23 }
   0xd   :  { %p415_p6 = por %p414_p5, %p413_p4 }
   0xf   :  { %p416_p7 = pnand %p415_p6, %p409_p3 }
  0x11   :  { %419 = shalt.err (!%p416_p7)
}
  0x12   :  { %30 = dma.hbm_to_vmem [thread:$0]  %s623_s1, 128, %s28_s13, [#allocation6]  }
  0x13   :  { %s420_s28 = scalar_lea.hbm %s622_s0, 256 }
  0x14   :  { %p421_p8 = scmp.ne.s32.totalorder %s622_s0, %s420_s28  ;;  %p424_p9 = scmp.lt.u32.totalorder %s420_s28, %s622_s0 }
  0x16   :  { %p426_p10 = pnand %p424_p9, %p421_p8 }
  0x18   :  { %429 = shalt.err (!%p426_p10)
}
  0x19   :  { %s430_s6 = scalar_lea.vmem %s18_s15, 256  ;;  %p435_p12 = scmp.lt.s32.totalorder %s18_s15, %s18_s15 }
  0x1a   :  { %p431_p11 = scmp.ne.s32.totalorder %s18_s15, %s430_s6  ;;  %p436_p13 = scmp.lt.s32.totalorder %s430_s6, %s430_s6 }
  0x1c   :  { %p437_p0 = por %p436_p13, %p435_p12 }
  0x1e   :  { %p438_p1 = pnand %p437_p0, %p431_p11 }
  0x20   :  { %441 = shalt.err (!%p438_p1)
}
  0x21   :  { %20 = dma.hbm_to_vmem [thread:$0]  %s622_s0, 256, %s18_s15, [#allocation3]  }
  0x22   :  { %s494_s8 = smov [#allocation7]   ;;  %s442_s12 = scalar_lea.hbm %s624_s2, 128 }
  0x23   :  { %s37_s9 = sshll.u32 %s494_s8, 4  ;;  %p443_p2 = scmp.ne.s32.totalorder %s624_s2, %s442_s12  ;;  %s38_s9 = int_to_ptr.vmem [resolvable:$true] %s37_s9 }
  0x24   :  { %p446_p3 = scmp.lt.u32.totalorder %s442_s12, %s624_s2 }
  0x26   :  { %p448_p4 = pnand %p446_p3, %p443_p2 }
  0x28   :  { %451 = shalt.err (!%p448_p4)
}
  0x29   :  { %s452_s18 = scalar_lea.vmem %s38_s9, 128  ;;  %p457_p6 = scmp.lt.s32.totalorder %s38_s9, %s38_s9 }
  0x2a   :  { %p453_p5 = scmp.ne.s32.totalorder %s38_s9, %s452_s18  ;;  %p458_p7 = scmp.lt.s32.totalorder %s452_s18, %s452_s18 }
  0x2c   :  { %p459_p8 = por %p458_p7, %p457_p6 }
  0x2e   :  { %p460_p9 = pnand %p459_p8, %p453_p5 }
  0x30   :  { %463 = shalt.err (!%p460_p9)
}
  0x31   :  { %40 = dma.hbm_to_vmem [thread:$0]  %s624_s2, 128, %s38_s9, [#allocation6]  }
  0x32   :  { %486 = dma.done.wait [#allocation3], 256  }
  0x33   :  { %487 = vsyncadd [#allocation3], 4294967040 }
  0x34   :  { %488 = dma.done.wait [#allocation6], 256  }
  0x35   :  { %489 = vsyncadd [#allocation6], 4294967040  ;;  %v58_v0 = vlaneseq  ;;  %v495_v1 = vmov 1983009808   ;;  %v50_v6 = vld [vmem:[#allocation2] sm:$0xff]  ;;  %v51_v7 = vld [vmem:[#allocation2 + $0x8] sm:$0xff] }
  0x36   :  { %v56_v2 = vunpack.c.l.s4 %v495_v1  ;;  %v54_v8 = vcombine.high %v50_v6, %v50_v6  ;;  %vm96_vm0 = vcmask 1041408   ;;  %v71_v12 = vcombine.high %v51_v7, %v51_v7  ;;  %s497_s2 = smov [#allocation8]  }
  0x37   :  { %v554_v3 = vshrl.u32 %v58_v0, 7  ;;  %v496_v33 = vmov 269488144   ;;  %s376_s19 = sshll.u32 %s497_s2, 4  ;;  %s377_s19 = int_to_ptr.vmem [resolvable:$true] %s376_s19 }
  0x38   :  { %v57_v4 = vunpack.c.0.s8 %v56_v2  ;;  %v117_v34 = vunpack.c.l.s4 %v496_v33  ;;  %s464_s20 = scalar_lea.vmem %s377_s19, 256  ;;  %p469_p11 = scmp.lt.s32.totalorder %s377_s19, %s377_s19 }
  0x39   :  { %p465_p10 = scmp.ne.s32.totalorder %s377_s19, %s464_s20  ;;  %p470_p12 = scmp.lt.s32.totalorder %s464_s20, %s464_s20 }
  0x3a   :  { %v557_v5 = vsub.s32 %v57_v4, %v554_v3  ;;  %v118_v35 = vunpack.c.0.s8 %v117_v34 }
  0x3b   :  { %p471_p13 = por %p470_p12, %p469_p11 }
  0x3c   :  { %v61_v9 = vrot.slane %v50_v6, %v557_v5  ;;  %v68_v10 = vrot.slane %v54_v8, %v557_v5  ;;  %v78_v13 = vrot.slane %v51_v7, %v557_v5  ;;  %v85_v19 = vrot.slane %v71_v12, %v557_v5 }
  0x3d   :  { %v121_v36 = vsub.s32 %v118_v35, %v554_v3  ;;  %p472_p0 = pnand %p471_p13, %p465_p10 }
  0x3e   :  { %v69_v11 = vcombine.high %v61_v9, %v61_v9  ;;  %v97_v14 = vsel %vm96_vm0, %v61_v9, 0.0  ;;  %v70_v15 = vcombine.high %v68_v10, %v68_v10  ;;  %v100_v17 = vsel %vm96_vm0, %v68_v10, 0.0 }
  0x3f   :  { %v86_v20 = vcombine.high %v78_v13, %v78_v13  ;;  %v104_v23 = vsel %vm96_vm0, %v78_v13, 0.0  ;;  %v87_v25 = vcombine.high %v85_v19, %v85_v19  ;;  %v108_v28 = vsel %vm96_vm0, %v85_v19, 0.0 }
  0x40   :  { %v98_v16 = vsel %vm96_vm0, %v69_v11, 0.0  ;;  %v102_v21 = vsel %vm96_vm0, %v70_v15, 0.0  ;;  %v296_v15 = vld [vmem:[#allocation7] sm:$0xff]  ;;  %v216_v19 = vsub.s32 3, %v554_v3 }
  0x41   :  { %v99_v18 = vadd.f32 %v98_v16, %v97_v14  ;;  %v106_v26 = vsel %vm96_vm0, %v86_v20, 0.0  ;;  %v110_v30 = vsel %vm96_vm0, %v87_v25, 0.0  ;;  %v204_v16 = vsub.s32 0, %v554_v3  ;;  %v200_v20 = vld [vmem:[#allocation5] sm:$0xff] }
  0x43   :  { %v101_v22 = vadd.f32 %v100_v17, %v99_v18  ;;  %v208_v17 = vsub.s32 1, %v554_v3  ;;  %v212_v18 = vsub.s32 2, %v554_v3  ;;  %v301_v25 = vrot.slane %v296_v15, %v204_v16 }
  0x44   :  { %v205_v33 = vrot.slane %v200_v20, %v204_v16 }
  0x45   :  { %v103_v24 = vadd.f32 %v102_v21, %v101_v22  ;;  %v220_v21 = vsub.s32 4, %v554_v3  ;;  %v224_v22 = vsub.s32 5, %v554_v3  ;;  %v209_v34 = vrot.slane %v200_v20, %v208_v17 }
  0x46   :  { %v213_v35 = vrot.slane %v200_v20, %v212_v18 }
  0x47   :  { %v105_v27 = vadd.f32 %v104_v23, %v103_v24  ;;  %v228_v23 = vsub.s32 6, %v554_v3  ;;  %v232_v24 = vsub.s32 7, %v554_v3 }
  0x49   :  { %v107_v29 = vadd.f32 %v106_v26, %v105_v27  ;;  %v305_v26 = vrot.slane %v296_v15, %v208_v17  ;;  %v309_v27 = vrot.slane %v296_v15, %v212_v18 }
  0x4b   :  { %v109_v31 = vadd.f32 %v108_v28, %v107_v29  ;;  %v313_v28 = vrot.slane %v296_v15, %v216_v19  ;;  %v317_v29 = vrot.slane %v296_v15, %v220_v21 }
  0x4d   :  { %v111_v32 = vadd.f32 %v110_v30, %v109_v31  ;;  %v321_v30 = vrot.slane %v296_v15, %v224_v22  ;;  %v325_v31 = vrot.slane %v296_v15, %v228_v23 }
  0x4f   :  { %112 = vadd.xlane.f32.xlu0 %v111_v32  ;;  %v329_v32 = vrot.slane %v296_v15, %v232_v24  ;;  %v347_v3 = vcombine.low %v317_v29, %v321_v30 }
  0xdc   :  { %v113_v37 = vpop.xlane.xlu0 %112 }
  0xdd   :  { %v114_v38 = vmul.f32 0.0009765625, %v113_v37  ;;  %v221_v37 = vrot.slane %v200_v20, %v220_v21 }
  0xdf   :  { %v122_v39 = vrot.slane %v114_v38, %v121_v36  ;;  %v217_v36 = vrot.slane %v200_v20, %v216_v19  ;;  %v225_v38 = vrot.slane %v200_v20, %v224_v22 }
  0xe1   :  { %v572_v40 = vsub.f32 %v50_v6, %v122_v39  ;;  %v574_v41 = vsub.f32 %v51_v7, %v122_v39  ;;  %v229_v39 = vrot.slane %v200_v20, %v228_v23 }
  0xe3   :  { %v126_v42 = vmul.f32 %v572_v40, %v572_v40  ;;  %v127_v43 = vmul.f32 %v574_v41, %v574_v41 }
  0xe5   :  { %v130_v44 = vcombine.high %v126_v42, %v126_v42  ;;  %v137_v45 = vrot.slane %v126_v42, %v557_v5  ;;  %v154_v48 = vrot.slane %v127_v43, %v557_v5  ;;  %v147_v52 = vcombine.high %v127_v43, %v127_v43 }
  0xe6   :  { %v233_v42 = vrot.slane %v200_v20, %v232_v24  ;;  %v330_v43 = vcombine.low %v301_v25, %v305_v26 }
  0xe7   :  { %v144_v46 = vrot.slane %v130_v44, %v557_v5  ;;  %v145_v47 = vcombine.high %v137_v45, %v137_v45  ;;  %v172_v49 = vsel %vm96_vm0, %v137_v45, 0.0  ;;  %v161_v56 = vrot.slane %v147_v52, %v557_v5 }
  0xe8   :  { %v162_v57 = vcombine.high %v154_v48, %v154_v48  ;;  %v179_v60 = vsel %vm96_vm0, %v154_v48, 0.0  ;;  %v331_v44 = vcombine.low %v309_v27, %v313_v28 }
  0xe9   :  { %v173_v50 = vsel %vm96_vm0, %v145_v47, 0.0  ;;  %v146_v51 = vcombine.high %v144_v46, %v144_v46  ;;  %v175_v54 = vsel %vm96_vm0, %v144_v46, 0.0  ;;  %v163_v62 = vcombine.high %v161_v56, %v161_v56 }
  0xea   :  { %v174_v53 = vadd.f32 %v173_v50, %v172_v49  ;;  %v181_v63 = vsel %vm96_vm0, %v162_v57, 0.0  ;;  %v183_v1 = vsel %vm96_vm0, %v161_v56, 0.0  ;;  %v348_v46 = vcombine.low %v325_v31, %v329_v32 }
  0xeb   :  { %v177_v58 = vsel %vm96_vm0, %v146_v51, 0.0  ;;  %v185_v4 = vsel %vm96_vm0, %v163_v62, 0.0  ;;  %v338_v57 = vrot.slane %v330_v43, %v557_v5 }
  0xec   :  { %v176_v55 = vadd.f32 %v175_v54, %v174_v53  ;;  %v362_v62 = vrot.slane %v348_v46, %v557_v5 }
  0xee   :  { %v178_v59 = vadd.f32 %v177_v58, %v176_v55  ;;  %v345_v58 = vrot.slane %v331_v44, %v557_v5 }
  0xf0   :  { %v180_v61 = vadd.f32 %v179_v60, %v178_v59 }
  0xf2   :  { %v182_v0 = vadd.f32 %v181_v63, %v180_v61  ;;  %v355_v61 = vrot.slane %v347_v3, %v557_v5 }
  0xf4   :  { %v184_v2 = vadd.f32 %v183_v1, %v182_v0 }
  0xf6   :  { %v186_v6 = vadd.f32 %v185_v4, %v184_v2 }
  0xf8   :  { %187 = vadd.xlane.f32.xlu0 %v186_v6  ;;  %v346_v6 = vcombine.low %v338_v57, %v345_v58 }
 0x185   :  { %v188_v7 = vpop.xlane.xlu0 %187 }
 0x186   :  { %v189_v8 = vmul.f32 0.0009775171, %v188_v7 }
 0x188   :  { %394 = vrsqrt.f32 %v189_v8  ;;  %vm192_vm1 = vcmp.eq.f32.partialorder %v189_v8, inf  ;;  %v195_v11 = vand.u32 2147483648, %v189_v8  ;;  %vm194_vm2 = vcmp.eq.f32.partialorder %v189_v8, 0.0 }
 0x192   :  { %v395_v9 = vpop.eup %394 }
 0x193   :  { %v191_v10 = vmul.f32 %v395_v9, %v189_v8 }
 0x195   :  { %v193_v12 = vsel %vm192_vm1, %v189_v8, %v191_v10  ;;  %v363_v8 = vcombine.low %v355_v61, %v362_v62 }
 0x196   :  { %v196_v13 = vsel %vm194_vm2, %v195_v11, %v193_v12 }
 0x197   :  { %v197_v14 = vadd.f32 1e-05, %v196_v13 }
 0x199   :  { %396 = vrcp.f32 %v197_v14 }
 0x1a3   :  { %v397_v45 = vpop.eup %396 }
 0x1a4   :  { %v242_v47 = vmul.f32 %v397_v45, %v205_v33  ;;  %v243_v48 = vmul.f32 %v397_v45, %v209_v34  ;;  %v244_v49 = vmul.f32 %v397_v45, %v213_v35  ;;  %v245_v50 = vmul.f32 %v397_v45, %v217_v36 }
 0x1a5   :  { %v246_v51 = vmul.f32 %v397_v45, %v221_v37  ;;  %v247_v52 = vmul.f32 %v397_v45, %v225_v38  ;;  %v248_v53 = vmul.f32 %v397_v45, %v229_v39  ;;  %v249_v54 = vmul.f32 %v397_v45, %v233_v42 }
 0x1a6   :  { %v258_v55 = vcombine.low %v242_v47, %v243_v48  ;;  %v259_v56 = vcombine.low %v244_v49, %v245_v50 }
 0x1a7   :  { %v275_v59 = vcombine.low %v246_v51, %v247_v52  ;;  %v276_v60 = vcombine.low %v248_v53, %v249_v54 }
 0x1a8   :  { %v266_v63 = vrot.slane %v258_v55, %v557_v5  ;;  %v273_v0 = vrot.slane %v259_v56, %v557_v5 }
 0x1a9   :  { %v283_v1 = vrot.slane %v275_v59, %v557_v5  ;;  %v290_v2 = vrot.slane %v276_v60, %v557_v5 }
 0x1aa   :  { %v274_v4 = vcombine.low %v266_v63, %v273_v0 }
 0x1ab   :  { %v291_v7 = vcombine.low %v283_v1, %v290_v2 }
 0x1ac   :  { %v294_v9 = vmul.f32 %v274_v4, %v572_v40 }
 0x1ad   :  { %v295_v10 = vmul.f32 %v291_v7, %v574_v41 }
 0x1ae   :  { %v366_v11 = vadd.f32 %v346_v6, %v294_v9 }
 0x1af   :  { %v367_v12 = vadd.f32 %v363_v8, %v295_v10 }
 0x1b0   :  { %368 = vst [vmem:[#allocation8] sm:$0xff] %v366_v11 }
 0x1b1   :  { %369 = vst [vmem:[#allocation8 + $0x8] sm:$0xff] %v367_v12 }
 0x1b2   :  { %475 = shalt.err (!%p472_p0)
}
 0x1b3   :  { %s476_s23 = scalar_lea.hbm %s625_s3, 256 }
 0x1b4   :  { %p477_p1 = scmp.ne.s32.totalorder %s625_s3, %s476_s23  ;;  %p480_p2 = scmp.lt.u32.totalorder %s476_s23, %s625_s3 }
 0x1b6   :  { %p482_p3 = pnand %p480_p2, %p477_p1 }
 0x1b8   :  { %485 = shalt.err (!%p482_p3)
}
 0x1b9   :  { %379 = dma.vmem_to_hbm [thread:$0]  %s377_s19, 256, %s625_s3, [#allocation4]  }
 0x1ba   :  { %490 = dma.done.wait [#allocation4], 256  }
 0x1bb   :  { %491 = vsyncadd [#allocation4], 4294967040 }
 0x1bc   :  { %383 = vsyncpa [#allocation3], 1 }
 0x1bd   :  { %384 = vsyncpa [#allocation6], 1 }
 0x1be   :  { %385 = vsyncpa [#allocation4], 1 }

</bundles_post_ra>
